<compile_context>
chip_gen: v6e
topology: v6e:2x2x1
jax: 0.10.0
libtpu: 0.0.40
codegen_flags: <defaults>
</compile_context>

<pallas_src>
import jax
import jax.numpy as jnp
from jax.experimental import pallas as pl
from jax.experimental.pallas import tpu as pltpu


def _round_up(x, m):
    return (x + m - 1) // m * m


def _largest_proper_divisor(q):
    for d in range(q // 2, 0, -1):
        if q % d == 0:
            return d
    return 1


# ---------------------------------------------------------------------------
# Kernels
# ---------------------------------------------------------------------------

def _linear_kernel_multi_k(x_ref, w_ref, b_ref, o_ref, acc_ref):
    """grid = (M/tm, N/tn, K/tk), K innermost ("arbitrary").

    x_ref  : (tm, tk) activation tile (f32, cast to MXU dtype per tile)
    w_ref  : (tk, tn) weight tile (pre-transposed / padded / cast once at init)
    b_ref  : (1,  tn) bias tile (f32)
    o_ref  : (tm, tn) output tile (resident across the K axis)
    acc_ref: (tm, tn) f32 accumulator scratch
    """
    k = pl.program_id(2)

    @pl.when(k == 0)
    def _():
        # Initialise the accumulator with the broadcast bias: removes the extra
        # (tm, tn) VPU add from the epilogue.
        acc_ref[...] = jnp.broadcast_to(
            b_ref[...].astype(jnp.float32), acc_ref.shape)

    acc_ref[...] += jnp.dot(
        x_ref[...].astype(w_ref.dtype),          # bf16 operands -> full MXU rate
        w_ref[...],
        preferred_element_type=jnp.float32)

    @pl.when(k == pl.num_programs(2) - 1)
    def _():
        # Single lane-dense, unmasked full-width store.
        o_ref[...] = acc_ref[...].astype(o_ref.dtype)


def _linear_kernel_single_k(x_ref, w_ref, b_ref, o_ref):
    """Single-K-block variant: no accumulator scratch, direct write."""
    o_ref[...] = (
        jnp.dot(x_ref[...].astype(w_ref.dtype), w_ref[...],
                preferred_element_type=jnp.float32)
        + b_ref[...].astype(jnp.float32)
    ).astype(o_ref.dtype)


# ---------------------------------------------------------------------------
# Wrapper
# ---------------------------------------------------------------------------

class PallasLinear:
    """nn.Linear(in_features, out_features, bias=True) forward on TPU via Pallas.

    Weight handling (transpose to K-major, zero-pad to tile multiples, cast to
    the MXU operand dtype) happens once at construction — the per-call forward
    only pads the activations.
    """

    def __init__(self, weight, bias, *, tn_pref=1024, tk_pref=512,
                 mxu_dtype=jnp.bfloat16):
        N, K = weight.shape
        assert bias.shape == (N,)
        self.N, self.K = N, K
        self.tk = min(tk_pref, _round_up(K, 128))
        self.tn = min(tn_pref, _round_up(N, 128))
        self.Kp = _round_up(K, self.tk)
        self.Np = _round_up(N, self.tn)
        # One-time prep (outside the forward path). Zero padding on K contributes
        # nothing to the contraction; padded N columns are sliced off post-kernel.
        w_kn = jnp.transpose(weight, (1, 0))
        w_kn = jnp.pad(w_kn, ((0, self.Kp - K), (0, self.Np - N)))
        self.w = w_kn.astype(mxu_dtype)
        self.b = jnp.pad(bias.astype(jnp.float32).reshape(1, N),
                         ((0, 0), (0, self.Np - N)))

    def __call__(self, x, *, tm_pref=512):
        K, N, Kp, Np, tk = self.K, self.N, self.Kp, self.Np, self.tk
        assert x.shape[-1] == K
        lead_shape = x.shape[:-1]

        x2 = x.reshape(-1, K)                      # flatten batch dims onto M
        M = x2.shape[0]
        tm = min(tm_pref, _round_up(M, 8))
        Mp = _round_up(M, tm)
        x_p = jnp.pad(x2, ((0, Mp - M), (0, Kp - K)))

        # v7x has 2 TensorCores sharded over "parallel" grid axes: for skinny-M
        # GEMMs make sure at least one parallel axis has extent >= 2.
        tn = self.tn
        if Mp // tm == 1 and Np // tn == 1 and Np // 128 >= 2:
            tn = 128 * _largest_proper_divisor(Np // 128)

        n_k = Kp // tk
        grid_mn = (Mp // tm, Np // tn)

        w_bytes = jnp.dtype(self.w.dtype).itemsize
        footprint = (2 * tm * tk * x_p.dtype.itemsize   # x (double-buffered)
                     + 2 * tk * tn * w_bytes             # w (double-buffered)
                     + 2 * tn * 4                        # bias
                     + 2 * tm * tn * 4                   # out (double-buffered)
                     + (tm * tn * 4 if n_k > 1 else 0))  # f32 accumulator
        # Stay comfortably under v7x's 64 MiB physical VMEM while raising past the
        # v5e (16 MiB) / v6e (32 MiB) scoped defaults when larger tiles need it.
        vmem_limit = int(min(48 << 20, max(32 << 20, footprint + (4 << 20))))

        cost = pl.CostEstimate(
            flops=2 * Mp * Np * Kp,
            bytes_accessed=(Mp * Kp * x_p.dtype.itemsize
                            + Kp * Np * w_bytes
                            + Mp * Np * jnp.dtype(x.dtype).itemsize),
            transcendentals=0)

        if n_k == 1:
            out_p = pl.pallas_call(
                _linear_kernel_single_k,
                out_shape=jax.ShapeDtypeStruct((Mp, Np), x.dtype),
                grid_spec=pltpu.PrefetchScalarGridSpec(
                    num_scalar_prefetch=0,
                    grid=grid_mn,
                    in_specs=[
                        pl.BlockSpec((tm, tk), lambda i, j: (i, 0)),
                        pl.BlockSpec((tk, tn), lambda i, j: (0, j)),
                        pl.BlockSpec((1, tn), lambda i, j: (0, j)),
                    ],
                    out_specs=pl.BlockSpec((tm, tn), lambda i, j: (i, j)),
                ),
                compiler_params=pltpu.CompilerParams(
                    dimension_semantics=("parallel", "parallel"),
                    vmem_limit_bytes=vmem_limit),
                cost_estimate=cost,
            )(x_p, self.w, self.b)
        else:
            out_p = pl.pallas_call(
                _linear_kernel_multi_k,
                out_shape=jax.ShapeDtypeStruct((Mp, Np), x.dtype),
                grid_spec=pltpu.PrefetchScalarGridSpec(
                    num_scalar_prefetch=0,
                    grid=grid_mn + (n_k,),
                    in_specs=[
                        pl.BlockSpec((tm, tk), lambda i, j, k: (i, k)),
                        # If profiling shows exposed weight DMA (most likely on
                        # v5e), deepen with pipeline_mode=pl.Buffered(3).
                        pl.BlockSpec((tk, tn), lambda i, j, k: (k, j)),
                        pl.BlockSpec((1, tn), lambda i, j, k: (0, j)),
                    ],
                    out_specs=pl.BlockSpec((tm, tn), lambda i, j, k: (i, j)),
                    scratch_shapes=[pltpu.VMEM((tm, tn), jnp.float32)],
                ),
                compiler_params=pltpu.CompilerParams(
                    dimension_semantics=("parallel", "parallel", "arbitrary"),
                    vmem_limit_bytes=vmem_limit),
                cost_estimate=cost,
            )(x_p, self.w, self.b)

        return out_p[:M, :N].reshape(*lead_shape, N)


def reference_forward(x, weight, bias):
    """Pure-JAX reference matching nn.Linear semantics."""
    y = jnp.einsum("...k,nk->...n", x, weight,
                   precision=jax.lax.Precision.HIGHEST)
    return y + bias


if __name__ == "__main__":
    key = jax.random.PRNGKey(0)
    k1, k2, k3, k4, k5, k6 = jax.random.split(key, 6)

    # Small shapes consistent with LinearLayer: x (batch=2, seq=8, in=32) -> out=16.
    B, S, IN, OUT = 2, 8, 32, 16
    x = jax.random.normal(k1, (B, S, IN), dtype=jnp.float32)
    w = jax.random.normal(k2, (OUT, IN), dtype=jnp.float32) * 0.1
    b = jax.random.normal(k3, (OUT,), dtype=jnp.float32) * 0.1

    layer = PallasLinear(w, b)                     # weight prepped once here
    out = jax.block_until_ready(layer(x))
    ref = jax.block_until_ready(reference_forward(x, w, b))
    assert out.shape == (B, S, OUT)
    assert jnp.allclose(out, ref, atol=2e-2, rtol=2e-2), "mismatch vs reference (small)"

    # Second check: force small tiles so the multi-K accumulator path, bias-init
    # epilogue and both parallel grid axes are exercised (grid = (2, 2, 3)).
    M2, K2, N2 = 256, 384, 256
    x2 = jax.random.normal(k4, (M2, K2), dtype=jnp.float32) * 0.05
    w2 = jax.random.normal(k5, (N2, K2), dtype=jnp.float32) * 0.05
    b2 = jax.random.normal(k6, (N2,), dtype=jnp.float32) * 0.1

    layer2 = PallasLinear(w2, b2, tn_pref=128, tk_pref=128)
    out2 = jax.block_until_ready(layer2(x2, tm_pref=128))
    ref2 = jax.block_until_ready(reference_forward(x2, w2, b2))
    assert out2.shape == (M2, N2)
    assert jnp.allclose(out2, ref2, atol=2e-2, rtol=2e-2), "mismatch vs reference (tiled)"

    print("KERNEL_OK")
</pallas_src>

<mosaic_0001>
module attributes {stable_mosaic.version = 11 : i64} {
  func.func @_linear_kernel_single_k(%arg0: i32, %arg1: i32, %arg2: memref<16x128xf32, #tpu.memory_space<vmem>>, %arg3: memref<128x128xbf16, #tpu.memory_space<vmem>>, %arg4: memref<1x128xf32, #tpu.memory_space<vmem>>, %arg5: memref<16x128xf32, #tpu.memory_space<vmem>>) attributes {dimension_semantics = [#tpu.dimension_semantics<parallel>, #tpu.dimension_semantics<parallel>], iteration_bounds = array<i64: 1, 1>, scalar_prefetch = 0 : i64, scratch_operands = 0 : i64, tpu.core_type = #tpu.core_type<tc>, window_params = [{transform_indices = @transform_0, window_bounds = array<i64: 16, 128>}, {transform_indices = @transform_1, window_bounds = array<i64: 128, 128>}, {transform_indices = @transform_2, window_bounds = array<i64: 1, 128>}, {transform_indices = @transform_3, window_bounds = array<i64: 16, 128>}]} {
    %c0 = arith.constant 0 : index
    %c0_0 = arith.constant 0 : index
    %0 = vector.load %arg2[%c0, %c0_0] : memref<16x128xf32, #tpu.memory_space<vmem>>, vector<16x128xf32>
    %1 = arith.truncf %0 : vector<16x128xf32> to vector<16x128xbf16>
    %c0_1 = arith.constant 0 : index
    %c0_2 = arith.constant 0 : index
    %2 = vector.load %arg3[%c0_1, %c0_2] : memref<128x128xbf16, #tpu.memory_space<vmem>>, vector<128x128xbf16>
    %cst = arith.constant dense<0.000000e+00> : vector<16x128xf32>
    %3 = tpu.matmul %1, %2, %cst {dimension_numbers = #tpu.dot_dimension_numbers<[1], [0], [0], [1], [0, 0, 1, 1], [], []>} : vector<16x128xbf16>, vector<128x128xbf16>, vector<16x128xf32> -> vector<16x128xf32>
    %c0_3 = arith.constant 0 : index
    %c0_4 = arith.constant 0 : index
    %4 = vector.load %arg4[%c0_3, %c0_4] : memref<1x128xf32, #tpu.memory_space<vmem>>, vector<1x128xf32>
    %5 = vector.broadcast %4 : vector<1x128xf32> to vector<16x128xf32>
    %6 = arith.addf %3, %5 : vector<16x128xf32>
    %c0_5 = arith.constant 0 : index
    %c0_6 = arith.constant 0 : index
    %7 = vector.load %arg5[%c0_5, %c0_6] : memref<16x128xf32, #tpu.memory_space<vmem>>, vector<16x128xf32>
    tpu.vector_store %arg5[%c0_5, %c0_6], %6 {strides = array<i32>} : memref<16x128xf32, #tpu.memory_space<vmem>>, vector<16x128xf32>,
    return
  }
  func.func @transform_0(%arg0: i32, %arg1: i32) -> (i32, i32) {
    %c0_i32 = arith.constant 0 : i32
    %c0_i32_0 = arith.constant 0 : i32
    return %arg0, %c0_i32 : i32, i32
  }
  func.func @transform_1(%arg0: i32, %arg1: i32) -> (i32, i32) {
    %c0_i32 = arith.constant 0 : i32
    %c0_i32_0 = arith.constant 0 : i32
    return %c0_i32, %arg1 : i32, i32
  }
  func.func @transform_2(%arg0: i32, %arg1: i32) -> (i32, i32) {
    %c0_i32 = arith.constant 0 : i32
    %c0_i32_0 = arith.constant 0 : i32
    return %c0_i32, %arg1 : i32, i32
  }
  func.func @transform_3(%arg0: i32, %arg1: i32) -> (i32, i32) {
    %c0_i32 = arith.constant 0 : i32
    return %arg0, %arg1 : i32, i32
  }
}

</mosaic_0001>

<bundles_post_ra>
// kernel: tpu_custom_call.1
= control target key start
LH: loop header
LB: loop body
LE: loop exit
PB: predicated region body
PF: predicated region fallthrough
CT: control target
= control target key end

     0   :  { %8 = vsyncpa [#allocation3], 0  ;;  %s347_s0 = inlined_call_operand.hbm [shape: f32[16,128], index: 0, kind: input, shape index: {}]   ;;  %s348_s1 = inlined_call_operand.hbm [shape: bf16[128,128], index: 1, kind: input, shape index: {}]   ;;  %s349_s2 = inlined_call_operand.vmem [shape: f32[1,128], index: 2, kind: input, shape index: {}]   ;;  %s350_s3 = inlined_call_operand.hbm [shape: f32[16,128], index: 3, kind: output, shape index: {}]  }
   0x1   :  { %9 = vsyncpa [#allocation6], 0 }
   0x2   :  { %10 = vsyncpa [#allocation4], 0  ;;  %s300_s12 = smov [#allocation2]  }
   0x3   :  { %s16_s13 = sshll.u32 %s300_s12, 4  ;;  %s17_s13 = int_to_ptr.vmem [resolvable:$true] %s16_s13 }
   0x4   :  { %s242_s14 = scalar_lea.vmem %s17_s13, 256  ;;  %p247_p1 = scmp.lt.s32.totalorder %s17_s13, %s17_s13 }
   0x5   :  { %p243_p0 = scmp.ne.s32.totalorder %s17_s13, %s242_s14  ;;  %p248_p2 = scmp.lt.s32.totalorder %s242_s14, %s242_s14 }
   0x7   :  { %p249_p3 = por %p248_p2, %p247_p1 }
   0x9   :  { %p250_p4 = pnand %p249_p3, %p243_p0 }
   0xb   :  { %253 = shalt.err (!%p250_p4)
}
   0xc   :  { %s301_s15 = smov 128   ;;  %s302_s16 = smov 8  }
   0xd   :  { %22 = dma.hbm_to_vmem [thread:$0]  %s347_s0, 256, %s17_s13, [#allocation3], %s301_s15, %s301_s15, %s302_s16  }
   0xe   :  { %s303_s19 = smov [#allocation5]  }
   0xf   :  { %s28_s20 = sshll.u32 %s303_s19, 4  ;;  %s29_s20 = int_to_ptr.vmem [resolvable:$true] %s28_s20 }
  0x10   :  { %s262_s21 = scalar_lea.vmem %s29_s20, 1024  ;;  %p267_p6 = scmp.lt.s32.totalorder %s29_s20, %s29_s20 }
  0x11   :  { %p263_p5 = scmp.ne.s32.totalorder %s29_s20, %s262_s21  ;;  %p268_p7 = scmp.lt.s32.totalorder %s262_s21, %s262_s21 }
  0x13   :  { %p269_p8 = por %p268_p7, %p267_p6 }
  0x15   :  { %p270_p9 = pnand %p269_p8, %p263_p5 }
  0x17   :  { %273 = shalt.err (!%p270_p9)
}
  0x18   :  { %s304_s22 = smov 64   ;;  %s305_s23 = smov 4  }
  0x19   :  { %34 = dma.hbm_to_vmem [thread:$0]  %s348_s1, 1024, %s29_s20, [#allocation6], %s304_s22, %s304_s22, %s305_s23  }
  0x1a   :  { %294 = dma.done.wait [#allocation3], 256  }
  0x1b   :  { %295 = vsyncadd [#allocation3], 4294967040 }
  0x1c   :  { %296 = dma.done.wait [#allocation6], 1024  }
  0x1d   :  { %297 = vsyncadd [#allocation6], 4294966272  ;;  %v306_v0 = vmov 0.0   ;;  %vm307_vm0 = vmmov 0   ;;  %v226_v1 = vld [vmem:[#allocation5 + $0x38] sm:$0xff]   ;;  %v227_v2 = vld [vmem:[#allocation5 + $0x30] sm:$0xff]  }
  0x1e   :  { %197 = vmatprep.subr.bf16.mxu0 %v306_v0  ;;  %213 = vmatprep.mubr.msk.bf16.mxu0 %vm307_vm0, %v306_v0  ;;  %v228_v3 = vld [vmem:[#allocation5 + $0x28] sm:$0xff]   ;;  %v229_v4 = vld [vmem:[#allocation5 + $0x20] sm:$0xff]   ;;  %v230_v5 = vld [vmem:[#allocation5 + $0x18] sm:$0xff]   ;;  %s308_s26 = smov [#allocation7]  }
  0x1f   :  { %198 = vmatpush3.bf16.msra.mxu0 %v226_v1  ;;  %v231_v6 = vld [vmem:[#allocation5 + $0x10] sm:$0xff]   ;;  %v232_v7 = vld [vmem:[#allocation5 + $0x8] sm:$0xff]   ;;  %v233_v8 = vld [vmem:[#allocation5] sm:$0xff]   ;;  %s166_s27 = sshll.u32 %s308_s26, 4  ;;  %s167_s27 = int_to_ptr.vmem [resolvable:$true] %s166_s27 }
  0x20   :  { %199 = vmatprep.subr.bf16.mxu0 %v306_v0  ;;  %v44_v9 = vld [vmem:[#allocation2] sm:$0xff]  ;;  %v45_v10 = vld [vmem:[#allocation2 + $0x8] sm:$0xff]  ;;  %s274_s28 = scalar_lea.vmem %s167_s27, 256  ;;  %p279_p11 = scmp.lt.s32.totalorder %s167_s27, %s167_s27 }
  0x21   :  { %v46_v11 = vpack.c.bf16 %v45_v10, %v44_v9  ;;  %v179_v12 = vld [vmem:[%s349_s2] ss:$0 sm:$0xff]  ;;  %p275_p10 = scmp.ne.s32.totalorder %s167_s27, %s274_s28  ;;  %p280_p12 = scmp.lt.s32.totalorder %s274_s28, %s274_s28 }
  0x23   :  { %200 = vmatpush3.bf16.msra.mxu0 %v227_v2  ;;  %p281_p13 = por %p280_p12, %p279_p11 }
  0x24   :  { %201 = vmatprep.subr.bf16.mxu0 %v306_v0 }
  0x25   :  { %p282_p0 = pnand %p281_p13, %p275_p10 }
  0x27   :  { %202 = vmatpush3.bf16.msra.mxu0 %v228_v3 }
  0x28   :  { %203 = vmatprep.subr.bf16.mxu0 %v306_v0 }
  0x2b   :  { %204 = vmatpush3.bf16.msra.mxu0 %v229_v4 }
  0x2c   :  { %205 = vmatprep.subr.bf16.mxu0 %v306_v0 }
  0x2f   :  { %206 = vmatpush3.bf16.msra.mxu0 %v230_v5 }
  0x30   :  { %207 = vmatprep.subr.bf16.mxu0 %v306_v0 }
  0x33   :  { %208 = vmatpush3.bf16.msra.mxu0 %v231_v6 }
  0x34   :  { %209 = vmatprep.subr.bf16.mxu0 %v306_v0 }
  0x37   :  { %210 = vmatpush3.bf16.msra.mxu0 %v232_v7 }
  0x38   :  { %211 = vmatprep.subr.bf16.mxu0 %v306_v0 }
  0x3b   :  { %212 = vmatpush3.bf16.msra.mxu0 %v233_v8 }
  0x3e   :  { %214 = vmatmul.mubr.bf16.vlgmr.msra.gmra.mxu0 %v46_v11 }
  0xfe   :  { %v152_v13 = vpop.f32.mrf.mxu0 }
  0xff   :  { %v153_v14 = vadd.f32 %v179_v12, %v152_v13 }
 0x100   :  { %v215_v15 = vpop.f32.mrf.mxu0 }
 0x101   :  { %159 = vst [vmem:[#allocation7] sm:$0xff] %v153_v14 }
 0x102   :  { %v155_v16 = vpop.f32.mrf.mxu0 }
 0x103   :  { %v156_v17 = vadd.f32 %v179_v12, %v155_v16 }
 0x104   :  { %v216_v18 = vpop.f32.mrf.mxu0 }
 0x105   :  { %160 = vst [vmem:[#allocation7 + $0x8] sm:$0xff] %v156_v17 }
 0x106   :  { %285 = shalt.err (!%p282_p0)
}
 0x107   :  { %172 = dma.vmem_to_hbm [thread:$0]  %s167_s27, 256, %s350_s3, [#allocation4], %s301_s15, %s301_s15, %s302_s16  }
 0x108   :  { %298 = dma.done.wait [#allocation4], 256  }
 0x109   :  { %299 = vsyncadd [#allocation4], 4294967040 }
 0x10a   :  { %176 = vsyncpa [#allocation3], 1 }
 0x10b   :  { %177 = vsyncpa [#allocation6], 1 }
 0x10c   :  { %178 = vsyncpa [#allocation4], 1 }

</bundles_post_ra>
